<compile_context>
chip_gen: v5e
topology: v5e:2x2
jax: 0.10.0
libtpu: 0.0.40
codegen_flags: <defaults>
</compile_context>

<pallas_src>
import jax
import jax.numpy as jnp
from jax.experimental import pallas as pl
from jax.experimental.pallas import tpu as pltpu

# Packed-sublane granularity per element size (f32 -> 8, bf16 -> 16, int8 -> 32).
_SUBLANE = {4: 8, 2: 16, 1: 32}
# Scoped-VMEM ceiling we request; safe on v5e/v6e (128 MiB physical) and equal
# to the v7x default (32 MiB scoped of 64 MiB physical).
_VMEM_LIMIT_BYTES = 32 * 1024 * 1024


def _block_budget_bytes() -> int:
    """Per-block byte budget, derived from the chip's VMEM when queryable.

    4 live buffers (2-deep in + 2-deep out) must stay well under scoped VMEM:
    v5e/v6e (128 MiB physical) -> 4 MiB blocks; v7x (64 MiB) -> 2 MiB blocks.
    """
    try:
        cap = pltpu.get_tpu_info().vmem_capacity_bytes
        return int(max(1 << 20, min(8 << 20, cap // 32)))
    except Exception:
        return 4 << 20


def _divisors(n: int):
    small, large = [], []
    i = 1
    while i * i <= n:
        if n % i == 0:
            small.append(i)
            if i != n // i:
                large.append(n // i)
        i += 1
    return small + large[::-1]  # ascending


def _plan_copy(n: int, itemsize: int):
    """Pick (rows, width, block_rows) for a lane-dense 2D copy, or None to bypass."""
    if n == 0:
        return None
    sublane = _SUBLANE.get(itemsize, 8)
    budget = _block_budget_bytes()
    total = n * itemsize

    if n % 128 != 0:
        # Non-lane-multiple flat size: the only legal layout without padding is
        # one full-extent block; only allow it while it fits the VMEM budget.
        # TODO(synk): pad to a 128-lane multiple with a masked tail for large odd n.
        return (1, n, 1) if total <= budget else None

    m = n // 128
    if total <= budget:
        # Whole array fits in a single block.  Still prefer >=2 sublane-aligned
        # blocks so input/output DMAs overlap and v7x can shard across both TCs.
        for d in sorted(_divisors(m), reverse=True):
            rows = m // d
            if rows % (2 * sublane) == 0:
                return (rows, 128 * d, rows // 2)
        return (1, n, 1)  # tiny / non-splittable: one full block (still <= budget)

    # Array larger than one block: widest lane-dense width whose rows tile into
    # sublane-aligned blocks within the budget (=> grid length >= 2 automatically).
    for d in sorted(_divisors(m), reverse=True):
        width = 128 * d
        rows = m // d
        row_bytes = width * itemsize
        if rows % sublane != 0 or row_bytes * sublane > budget:
            continue
        cap_rows = (budget // row_bytes) // sublane * sublane
        block_rows = None
        for br in _divisors(rows):
            if br % sublane == 0 and br <= cap_rows and br < rows:
                block_rows = br  # largest such divisor (ascending scan)
        if block_rows is not None:
            return (rows, width, block_rows)

    # TODO(synk): no clean lane-dense tiling for this size; bypass the demo kernel.
    return None


def _copy_kernel(x_ref, o_ref):
    # Pure pass-through: the reference forward applies no computation.
    o_ref[...] = x_ref[...]


@jax.jit
def attention_copy(x: jax.Array) -> jax.Array:
    """Opt-in lane-dense, VMEM-budgeted identity pass through a Pallas kernel."""
    itemsize = jnp.dtype(x.dtype).itemsize
    plan = _plan_copy(int(x.size), int(itemsize))
    if plan is None:
        return x
    rows, width, block_rows = plan
    n_blocks = rows // block_rows
    x2d = x.reshape(rows, width)

    y2d = pl.pallas_call(
        _copy_kernel,
        out_shape=jax.ShapeDtypeStruct((rows, width), x2d.dtype),
        grid_spec=pltpu.PrefetchScalarGridSpec(
            num_scalar_prefetch=0,
            grid=(n_blocks,),
            in_specs=[pl.BlockSpec((block_rows, width), lambda i: (i, 0))],
            out_specs=pl.BlockSpec((block_rows, width), lambda i: (i, 0)),
        ),
        compiler_params=pltpu.CompilerParams(
            # Row chunks are independent -> shardable across v7x's two TCs.
            dimension_semantics=("parallel",),
            vmem_limit_bytes=_VMEM_LIMIT_BYTES,
        ),
        cost_estimate=pl.CostEstimate(
            flops=0,
            transcendentals=0,
            bytes_accessed=2 * rows * width * int(itemsize),
        ),
    )(x2d)
    return y2d.reshape(x.shape)


def attention_passthrough(x: jax.Array) -> jax.Array:
    """Default path: the reference forward is a no-op, so do not touch HBM at all."""
    return x


class Attention:
    """JAX mirror of the PyTorch stub module."""

    def __init__(self):
        # Reference __init__ defines no parameters.
        pass

    def forward(self, *args, **kwargs):
        # Reference forward is `pass` -> returns None for any input.  No kernel
        # is launched here (a copy kernel can only add HBM traffic to a no-op).
        return None

    def initialize(self, *args, **kwargs):
        raise NotImplementedError

    def get(self):
        raise NotImplementedError


if __name__ == "__main__":
    key = jax.random.PRNGKey(0)
    shape = (2, 4, 16, 16)
    x = jax.random.normal(key, shape, dtype=jnp.float32)

    # Opt-in Pallas copy path (multi-block (8,128)-tiled, lane-dense); verify it
    # is a faithful no-op.  No buffer donation, so `x` remains valid afterwards.
    y = attention_copy(x)
    jax.block_until_ready(y)
    assert y.shape == shape and y.dtype == jnp.float32
    assert bool(jnp.all(y == x))

    # Single-full-block path with dtype-aware (bf16) sublane handling.
    xb = jax.random.normal(jax.random.PRNGKey(0), (4, 8, 64), dtype=jnp.bfloat16)
    yb = attention_copy(xb)
    jax.block_until_ready(yb)
    assert yb.shape == xb.shape and yb.dtype == jnp.bfloat16
    assert bool(jnp.all(yb == xb))

    # Default module path: zero-copy identity helper and stub-matching forward.
    assert attention_passthrough(x) is x
    mod = Attention()
    assert mod.forward(x) is None

    print("KERNEL_OK")
</pallas_src>

<mosaic_0001>
module attributes {stable_mosaic.version = 11 : i64} {
  func.func @_copy_kernel(%arg0: i32, %arg1: memref<8x128xf32, #tpu.memory_space<vmem>>, %arg2: memref<8x128xf32, #tpu.memory_space<vmem>>) attributes {dimension_semantics = [#tpu.dimension_semantics<parallel>], iteration_bounds = array<i64: 2>, scalar_prefetch = 0 : i64, scratch_operands = 0 : i64, tpu.core_type = #tpu.core_type<tc>, window_params = [{transform_indices = @transform_0, window_bounds = array<i64: 8, 128>}, {transform_indices = @transform_1, window_bounds = array<i64: 8, 128>}]} {
    %c0 = arith.constant 0 : index
    %c0_0 = arith.constant 0 : index
    %0 = vector.load %arg1[%c0, %c0_0] : memref<8x128xf32, #tpu.memory_space<vmem>>, vector<8x128xf32>
    %c0_1 = arith.constant 0 : index
    %c0_2 = arith.constant 0 : index
    %1 = vector.load %arg2[%c0_1, %c0_2] : memref<8x128xf32, #tpu.memory_space<vmem>>, vector<8x128xf32>
    tpu.vector_store %arg2[%c0_1, %c0_2], %0 {strides = array<i32>} : memref<8x128xf32, #tpu.memory_space<vmem>>, vector<8x128xf32>,
    return
  }
  func.func @transform_0(%arg0: i32) -> (i32, i32) {
    %c0_i32 = arith.constant 0 : i32
    %c0_i32_0 = arith.constant 0 : i32
    return %arg0, %c0_i32 : i32, i32
  }
  func.func @transform_1(%arg0: i32) -> (i32, i32) {
    %c0_i32 = arith.constant 0 : i32
    %c0_i32_0 = arith.constant 0 : i32
    return %arg0, %c0_i32 : i32, i32
  }
}

</mosaic_0001>

<bundles_post_ra>
// kernel: attention_copy.1
= control target key start
LH: loop header
LB: loop body
LE: loop exit
PB: predicated region body
PF: predicated region fallthrough
CT: control target
= control target key end

     0   :  { %s188_s6 = smov 0   ;;  %s208_s0 = inlined_call_operand.vmem [shape: f32[16,128], index: 0, kind: input, shape index: {}]   ;;  %s209_s1 = inlined_call_operand.vmem [shape: f32[16,128], index: 1, kind: output, shape index: {}]  }
   0x1 LB: > { %s167_s7 = sadd.s32 4294967295, %s190_s6   ;;  %p171_p0 = scmp.ge.s32.totalorder %s190_s6, 1  ;;  %s190_s6 = sphi %s188_s6, %s11_s6  }
   0x2   : > { %p86_p1 = scmp.lt.s32.totalorder %s190_s6, 3 }
   0x4   : > { %p87_p2 = pnand %p171_p0, %p86_p1 }
   0x5   : > { %p104_p3 = scmp.lt.s32.totalorder (!%p87_p2), %s167_s7, 1 }
   0x6   : > { %90 = sbr.rel (%p87_p2) target bundleno = 16 (0x10), region = 24 }
   0xb   : > { %s211_s7 = smov (!%p104_p3, %s167_s7), 1 }
   0xc   : > { %s172_s8 = sshll.u32 %s211_s7, 3 }
   0xd   : > { %s107_s11 = scalar_lea.vmem %s208_s0, %s172_s8  ;;  %s111_s14 = scalar_lea.vmem %s209_s1, %s172_s8 }
   0xe   : > { %v112_v0 = vld [vmem:[%s107_s11] sm:$0xff] }
   0xf   : > { %113 = vst [vmem:[%s111_s14] sm:$0xff] %v112_v0 }
  0x10 PF: > { %s11_s6 = sadd.s32 1, %s190_s6  }
  0x11   : > { %p8_p4 = scmp.ge.s32.totalorder %s11_s6, 4  }
  0x13   :  { %10 = sbr.rel (!%p8_p4) target bundleno = 1 (0x1), region = 54 }

</bundles_post_ra>
